<compile_context>
chip_gen: v7x
topology: tpu7x:2x2x1
jax: 0.10.0
libtpu: 0.0.40
codegen_flags: <defaults>
</compile_context>

<pallas_src>
import jax
import jax.numpy as jnp
from jax.experimental import pallas as pl
from jax.experimental.pallas import tpu as pltpu


# ---------------------------------------------------------------------------
# Bias-pack lane offsets (one (1, 1536) fp32 array replaces 9 small streams).
#   [ bfo(256) | b0b(256) | bc2(128) | b1(128) | b2(256) | wc3(128) | wv(256)
#     | bc3(1) bv(1) pad ]
# ---------------------------------------------------------------------------
_BFO, _B0B, _BC2, _B1, _B2, _WC3, _WV, _BC3, _BV = (
    0, 256, 512, 640, 768, 1024, 1152, 1408, 1409)
_BIAS_W = 1536


def _agent_body(h01_ref, sc1_ref, wfo_ref, wc1o_ref, wmid_refs,
                w1_ref, w2_ref, bias_ref, out_ref, fuse_k256):
    relu = lambda x: jnp.maximum(x, 0.0)
    dot = lambda a, b: jnp.dot(a, b, preferred_element_type=jnp.float32)
    cd = wfo_ref.dtype                       # MXU streaming dtype (bf16)

    # Fused fc0[0] (cols 0:128) + fc_o (cols 128:144, zero-padded to 256).
    pre = dot(h01_ref[...], wfo_ref[...]) + bias_ref[:, _BFO:_BFO + 256]
    a = relu(pre[:, 0:128]).astype(cd)       # fc0[0] activation
    o = relu(pre[:, 128:256]).astype(cd)     # fc_o activation (lanes >=16 are 0)

    # fc_c[0]: the per-batch s-part (s @ wc1s + bc1) is hoisted to XLA and
    # arrives as sc1 rows; only the o-part matmul remains here.
    c1 = relu(sc1_ref[...] + dot(o, wc1o_ref[...])).astype(cd)          # (TM,128)

    if fuse_k256:
        # Block-diagonal fusion of fc0[2] (128->256) and fc_c[2] (128->128):
        # fills the full 256-deep MXU on v6e/v7x, ~2x fewer MXU issues.
        (wblk_ref,) = wmid_refs
        x = jnp.concatenate([a, c1], axis=-1)                           # (TM,256)
        mid = dot(x, wblk_ref[...])                                     # (TM,384)
        b = relu(mid[:, 0:256] + bias_ref[:, _B0B:_B0B + 256]).astype(cd)
        c2 = relu(mid[:, 256:384] + bias_ref[:, _BC2:_BC2 + 128])       # fp32
    else:
        # v5e path: MXU depth is 128, keep the two K=128 matmuls separate.
        w0b_ref, wc2_ref = wmid_refs
        b = relu(dot(a, w0b_ref[...]) + bias_ref[:, _B0B:_B0B + 256]).astype(cd)
        c2 = relu(dot(c1, wc2_ref[...]) + bias_ref[:, _BC2:_BC2 + 128])

    # fc_c[4] (64 -> 1): VPU multiply + lane reduction instead of an MXU pass.
    wgt = (jnp.sum(c2 * bias_ref[:, _WC3:_WC3 + 128], axis=-1, keepdims=True)
           + bias_ref[:, _BC3:_BC3 + 1])

    # fc1 -> fc2 -> value (output widths zero-padded to 128-lane multiples).
    c = relu(dot(b, w1_ref[...]) + bias_ref[:, _B1:_B1 + 128]).astype(cd)   # (TM,128)
    d = relu(dot(c, w2_ref[...]) + bias_ref[:, _B2:_B2 + 256])              # (TM,256)
    q = (jnp.sum(d * bias_ref[:, _WV:_WV + 256], axis=-1, keepdims=True)
         + bias_ref[:, _BV:_BV + 1])

    # Compact (TM, 1) store: no 128x HBM write amplification.
    out_ref[...] = q * wgt


def make_agent_kernel(fuse_k256):
    if fuse_k256:
        def kernel(h01_ref, sc1_ref, wfo_ref, wc1o_ref, wblk_ref,
                   w1_ref, w2_ref, bias_ref, out_ref):
            _agent_body(h01_ref, sc1_ref, wfo_ref, wc1o_ref, (wblk_ref,),
                        w1_ref, w2_ref, bias_ref, out_ref, True)
    else:
        def kernel(h01_ref, sc1_ref, wfo_ref, wc1o_ref, w0b_ref, wc2_ref,
                   w1_ref, w2_ref, bias_ref, out_ref):
            _agent_body(h01_ref, sc1_ref, wfo_ref, wc1o_ref, (w0b_ref, wc2_ref),
                        w1_ref, w2_ref, bias_ref, out_ref, False)
    return kernel


# ---------------------------------------------------------------------------
# Wrapper-side helpers.
# ---------------------------------------------------------------------------
def _round_up(x, m):
    return ((x + m - 1) // m) * m


def _cdiv(a, b):
    return (a + b - 1) // b


def _mxu_128_deep():
    """True on chips whose MXU contraction depth is 128 (v5e and older):
    the K=256 block-diagonal fusion would double real MXU work there."""
    try:
        kind = jax.devices()[0].device_kind.lower()
        return any(t in kind for t in ("v2", "v3", "v4", "v5"))
    except Exception:
        return False


def _prep_weights(params, N, fuse_k256, cd):
    f32 = jnp.float32
    # Fused fc0[0] + fc_o weight over the shared 204-wide input, padded to 256.
    wfo = jnp.zeros((204, 256), f32)
    wfo = wfo.at[:, 0:128].set(params['w0a']).at[:, 128:144].set(params['wo'])
    # fc_c[0] rows matching `o`, zero-padded from 16 to 128 rows.
    wc1o = jnp.zeros((128, 128), f32).at[0:16, :].set(params['wc1'][32:48])
    # fc_c[2] padded from 64 to 128 output columns.
    wc2p = jnp.zeros((128, 128), f32).at[:, 0:64].set(params['wc2'])
    # fc1 padded 64 -> 128 cols; fc2 padded 64 -> 128 rows and 150 -> 256 cols.
    w1p = jnp.zeros((256, 128), f32).at[:, 0:64].set(params['w1'])
    w2p = jnp.zeros((128, 256), f32).at[0:64, 0:N * 50].set(params['w2'])

    bias = jnp.zeros((1, _BIAS_W), f32)
    bias = bias.at[:, _BFO:_BFO + 128].set(params['b0a'])
    bias = bias.at[:, _BFO + 128:_BFO + 144].set(params['bo'])
    bias = bias.at[:, _B0B:_B0B + 256].set(params['b0b'])
    bias = bias.at[:, _BC2:_BC2 + 64].set(params['bc2'])
    bias = bias.at[:, _B1:_B1 + 64].set(params['b1'])
    bias = bias.at[:, _B2:_B2 + N * 50].set(params['b2'])
    bias = bias.at[:, _WC3:_WC3 + 64].set(params['wc3'].reshape(1, 64))
    bias = bias.at[:, _WV:_WV + N * 50].set(params['wv'].reshape(1, N * 50))
    bias = bias.at[:, _BC3:_BC3 + 1].set(params['bc3'])
    bias = bias.at[:, _BV:_BV + 1].set(params['bv'])

    if fuse_k256:
        wblk = jnp.zeros((256, 384), f32)            # blockdiag(w0b, wc2_pad)
        wblk = wblk.at[0:128, 0:256].set(params['w0b'])
        wblk = wblk.at[128:256, 256:384].set(wc2p)
        mids = (wblk,)
    else:
        mids = (params['w0b'], wc2p)

    mats = (wfo, wc1o) + mids + (w1p, w2p)
    return tuple(m.astype(cd) for m in mats) + (bias,)


def qmix_agent_forward(obs, params, tm=512, compute_dtype=jnp.bfloat16,
                       fuse_k256=None):
    if fuse_k256 is None:
        fuse_k256 = not _mxu_128_deep()

    bs, N = obs.shape[0], obs.shape[1]
    F = N * 51 * 4
    R = bs * N

    # ---- per-batch work hoisted to plain XLA (bs rows only, fp32) ----------
    h_flat = obs.reshape(bs, F).astype(jnp.float32)
    s = jnp.maximum(h_flat @ params['ws'] + params['bs'], 0.0)          # fc_s
    sc1 = s @ params['wc1'][:32] + params['bc1']          # s-part of fc_c[0]

    # ---- tile layout: >=2 tiles (v7x megacore) with bounded padding --------
    num_tiles = max(_cdiv(R, tm), 2 if R > 16 else 1)
    tm_eff = _round_up(_cdiv(R, num_tiles), 16)           # bf16 sublane packing
    R_pad = tm_eff * num_tiles

    h01 = h_flat.reshape(R, 51 * 4)                       # pure reshape
    h01 = jnp.pad(h01, ((0, R_pad - R), (0, 0))).astype(compute_dtype)
    sc1_rows = jnp.repeat(sc1, N, axis=0)                 # (R, 128), tiny
    sc1_rows = jnp.pad(sc1_rows, ((0, R_pad - R), (0, 0)))  # stays fp32

    weights = _prep_weights(params, N, fuse_k256, compute_dtype)

    in_specs = ([pl.BlockSpec((tm_eff, 51 * 4), lambda i: (i, 0)),
                 pl.BlockSpec((tm_eff, 128), lambda i: (i, 0))]
                + [pl.BlockSpec(w.shape, lambda i: (0, 0)) for w in weights])

    out = pl.pallas_call(
        make_agent_kernel(fuse_k256),
        out_shape=jax.ShapeDtypeStruct((R_pad, 1), jnp.float32),
        grid_spec=pltpu.PrefetchScalarGridSpec(
            num_scalar_prefetch=0,
            grid=(num_tiles,),
            in_specs=in_specs,
            out_specs=pl.BlockSpec((tm_eff, 1), lambda i: (i, 0)),
        ),
        compiler_params=pltpu.CompilerParams(
            dimension_semantics=("parallel",)),
    )(h01, sc1_rows, *weights)

    # ---- rebuild the PyTorch (bs, 50, N) replicated view + softmax ---------
    wq = out[:R, 0].reshape(bs, N)                 # one value per (batch, agent)
    wq_full = jnp.repeat(wq, 50, axis=1).reshape(bs, 50, N)
    # Softmax over an N(=2-3)-wide axis: XLA glue per perf review.
    return jax.nn.softmax(wq_full, axis=2)


# ---------------------------------------------------------------------------
# Pure-JAX fp32 reference (mirrors the PyTorch forward 1:1, repeats included).
# ---------------------------------------------------------------------------
def reference_forward(obs, params):
    bs, N = obs.shape[0], obs.shape[1]
    relu = lambda x: jnp.maximum(x, 0.0)
    h_flat = obs.reshape(bs, -1)
    h00 = jnp.repeat(h_flat, N * 50, axis=0)
    h01 = jnp.repeat(h_flat.reshape(-1, 51 * 4), 50, axis=0)
    s = relu(h00 @ params['ws'] + params['bs'])
    o = relu(h01 @ params['wo'] + params['bo'])
    os = jnp.concatenate([s, o], axis=-1)
    c1 = relu(os @ params['wc1'] + params['bc1'])
    c2 = relu(c1 @ params['wc2'] + params['bc2'])
    wgt = c2 @ params['wc3'] + params['bc3']
    a = relu(h01 @ params['w0a'] + params['b0a'])
    b = relu(a @ params['w0b'] + params['b0b'])
    c = relu(b @ params['w1'] + params['b1'])
    d = relu(c @ params['w2'] + params['b2'])
    q = d @ params['wv'] + params['bv']
    wq = (q * wgt).reshape(bs, 50, N)
    return jax.nn.softmax(wq, axis=2)


def init_linear(key, fan_in, fan_out):
    """PyTorch nn.Linear default init: U(-1/sqrt(fan_in), 1/sqrt(fan_in))."""
    k1, k2 = jax.random.split(key)
    bound = float(fan_in) ** -0.5
    w = jax.random.uniform(k1, (fan_in, fan_out), jnp.float32, -bound, bound)
    b = jax.random.uniform(k2, (1, fan_out), jnp.float32, -bound, bound)
    return w, b


if __name__ == "__main__":
    key = jax.random.PRNGKey(0)
    N = 3                                     # N = obs_space[0]
    keys = jax.random.split(key, 11)

    params = {}
    params['wo'], params['bo'] = init_linear(keys[0], 51 * 4, 16)          # fc_o
    params['ws'], params['bs'] = init_linear(keys[1], 4 * N * 51, 32)      # fc_s
    params['wc1'], params['bc1'] = init_linear(keys[2], 48, 128)           # fc_c[0]
    params['wc2'], params['bc2'] = init_linear(keys[3], 128, 64)           # fc_c[2]
    params['wc3'], params['bc3'] = init_linear(keys[4], 64, 1)             # fc_c[4]
    params['w0a'], params['b0a'] = init_linear(keys[5], 51 * 4, 128)       # fc0[0]
    params['w0b'], params['b0b'] = init_linear(keys[6], 128, 256)          # fc0[2]
    params['w1'], params['b1'] = init_linear(keys[7], 256, 64)             # fc1
    params['w2'], params['b2'] = init_linear(keys[8], 64, N * 50)          # fc2
    params['wv'], params['bv'] = init_linear(keys[9], N * 50, 1)           # value

    fuse_auto = not _mxu_128_deep()

    # Two cases: tiny batch (single tile, auto fusion choice) and a larger
    # batch exercising the multi-tile grid plus the other kernel variant.
    for bs, fuse in ((2, fuse_auto), (16, not fuse_auto)):
        # state[0] in the PyTorch module; shape (bs, obs_space[0], 51, 4)
        obs = jax.random.normal(jax.random.fold_in(keys[10], bs),
                                (bs, N, 51, 4), jnp.float32)
        fwd = jax.jit(lambda o, f=fuse: qmix_agent_forward(o, params, fuse_k256=f))
        out = jax.block_until_ready(fwd(obs))
        assert out.shape == (bs, 50, N)
        ref = reference_forward(obs, params)
        max_err = float(jnp.max(jnp.abs(out - ref)))
        # bf16 weights/activations with fp32 accumulation -> loosened tolerance.
        assert jnp.allclose(out, ref, atol=4e-2, rtol=4e-2), (bs, fuse, max_err)

    print("KERNEL_OK")
</pallas_src>

<mosaic_0001>
module attributes {stable_mosaic.version = 11 : i64} {
  func.func @kernel(%arg0: i32, %arg1: memref<16x204xbf16, #tpu.memory_space<vmem>>, %arg2: memref<16x128xf32, #tpu.memory_space<vmem>>, %arg3: memref<204x256xbf16, #tpu.memory_space<vmem>>, %arg4: memref<128x128xbf16, #tpu.memory_space<vmem>>, %arg5: memref<256x384xbf16, #tpu.memory_space<vmem>>, %arg6: memref<256x128xbf16, #tpu.memory_space<vmem>>, %arg7: memref<128x256xbf16, #tpu.memory_space<vmem>>, %arg8: memref<1x1536xf32, #tpu.memory_space<vmem>>, %arg9: memref<16x1xf32, #tpu.memory_space<vmem>>) attributes {dimension_semantics = [#tpu.dimension_semantics<parallel>], iteration_bounds = array<i64: 1>, scalar_prefetch = 0 : i64, scratch_operands = 0 : i64, tpu.core_type = #tpu.core_type<tc>, window_params = [{transform_indices = @transform_0, window_bounds = array<i64: 16, 204>}, {transform_indices = @transform_1, window_bounds = array<i64: 16, 128>}, {pipeline_mode = #tpu.pipeline_mode<synchronous>, transform_indices = @transform_2, window_bounds = array<i64: 204, 256>}, {pipeline_mode = #tpu.pipeline_mode<synchronous>, transform_indices = @transform_3, window_bounds = array<i64: 128, 128>}, {pipeline_mode = #tpu.pipeline_mode<synchronous>, transform_indices = @transform_4, window_bounds = array<i64: 256, 384>}, {pipeline_mode = #tpu.pipeline_mode<synchronous>, transform_indices = @transform_5, window_bounds = array<i64: 256, 128>}, {pipeline_mode = #tpu.pipeline_mode<synchronous>, transform_indices = @transform_6, window_bounds = array<i64: 128, 256>}, {pipeline_mode = #tpu.pipeline_mode<synchronous>, transform_indices = @transform_7, window_bounds = array<i64: 1, 1536>}, {transform_indices = @transform_8, window_bounds = array<i64: 16, 1>}]} {
    %c0 = arith.constant 0 : index
    %c0_0 = arith.constant 0 : index
    %0 = vector.load %arg1[%c0, %c0_0] : memref<16x204xbf16, #tpu.memory_space<vmem>>, vector<16x204xbf16>
    %c0_1 = arith.constant 0 : index
    %c0_2 = arith.constant 0 : index
    %1 = vector.load %arg3[%c0_1, %c0_2] : memref<204x256xbf16, #tpu.memory_space<vmem>>, vector<204x256xbf16>
    %cst = arith.constant dense<0.000000e+00> : vector<16x256xf32>
    %2 = tpu.matmul %0, %1, %cst {dimension_numbers = #tpu.dot_dimension_numbers<[1], [0], [0], [1], [0, 0, 1, 1], [], []>} : vector<16x204xbf16>, vector<204x256xbf16>, vector<16x256xf32> -> vector<16x256xf32>
    %c0_3 = arith.constant 0 : index
    %c0_4 = arith.constant 0 : index
    %3 = vector.load %arg8[%c0_3, %c0_4] : memref<1x1536xf32, #tpu.memory_space<vmem>>, vector<1x256xf32>
    %4 = vector.broadcast %3 : vector<1x256xf32> to vector<16x256xf32>
    %5 = arith.addf %2, %4 : vector<16x256xf32>
    %6 = vector.extract_strided_slice %5 {offsets = [0, 0], sizes = [16, 128], strides = [1, 1]} : vector<16x256xf32> to vector<16x128xf32>
    %cst_5 = arith.constant 0.000000e+00 : f32
    %7 = vector.broadcast %cst_5 : f32 to vector<16x128xf32>
    %8 = arith.maximumf %6, %7 : vector<16x128xf32>
    %9 = arith.truncf %8 : vector<16x128xf32> to vector<16x128xbf16>
    %10 = vector.extract_strided_slice %5 {offsets = [0, 128], sizes = [16, 128], strides = [1, 1]} : vector<16x256xf32> to vector<16x128xf32>
    %cst_6 = arith.constant 0.000000e+00 : f32
    %11 = vector.broadcast %cst_6 : f32 to vector<16x128xf32>
    %12 = arith.maximumf %10, %11 : vector<16x128xf32>
    %13 = arith.truncf %12 : vector<16x128xf32> to vector<16x128xbf16>
    %c0_7 = arith.constant 0 : index
    %c0_8 = arith.constant 0 : index
    %14 = vector.load %arg2[%c0_7, %c0_8] : memref<16x128xf32, #tpu.memory_space<vmem>>, vector<16x128xf32>
    %c0_9 = arith.constant 0 : index
    %c0_10 = arith.constant 0 : index
    %15 = vector.load %arg4[%c0_9, %c0_10] : memref<128x128xbf16, #tpu.memory_space<vmem>>, vector<128x128xbf16>
    %cst_11 = arith.constant dense<0.000000e+00> : vector<16x128xf32>
    %16 = tpu.matmul %13, %15, %cst_11 {dimension_numbers = #tpu.dot_dimension_numbers<[1], [0], [0], [1], [0, 0, 1, 1], [], []>} : vector<16x128xbf16>, vector<128x128xbf16>, vector<16x128xf32> -> vector<16x128xf32>
    %17 = arith.addf %14, %16 : vector<16x128xf32>
    %cst_12 = arith.constant 0.000000e+00 : f32
    %18 = vector.broadcast %cst_12 : f32 to vector<16x128xf32>
    %19 = arith.maximumf %17, %18 : vector<16x128xf32>
    %20 = arith.truncf %19 : vector<16x128xf32> to vector<16x128xbf16>
    %21 = tpu.concatenate %9, %20 in 1 : vector<16x128xbf16>, vector<16x128xbf16> -> vector<16x256xbf16>
    %c0_13 = arith.constant 0 : index
    %c0_14 = arith.constant 0 : index
    %22 = vector.load %arg5[%c0_13, %c0_14] : memref<256x384xbf16, #tpu.memory_space<vmem>>, vector<256x384xbf16>
    %cst_15 = arith.constant dense<0.000000e+00> : vector<16x384xf32>
    %23 = tpu.matmul %21, %22, %cst_15 {dimension_numbers = #tpu.dot_dimension_numbers<[1], [0], [0], [1], [0, 0, 1, 1], [], []>} : vector<16x256xbf16>, vector<256x384xbf16>, vector<16x384xf32> -> vector<16x384xf32>
    %24 = vector.extract_strided_slice %23 {offsets = [0, 0], sizes = [16, 256], strides = [1, 1]} : vector<16x384xf32> to vector<16x256xf32>
    %c0_16 = arith.constant 0 : index
    %c256 = arith.constant 256 : index
    %25 = vector.load %arg8[%c0_16, %c256] : memref<1x1536xf32, #tpu.memory_space<vmem>>, vector<1x256xf32>
    %26 = vector.broadcast %25 : vector<1x256xf32> to vector<16x256xf32>
    %27 = arith.addf %24, %26 : vector<16x256xf32>
    %cst_17 = arith.constant 0.000000e+00 : f32
    %28 = vector.broadcast %cst_17 : f32 to vector<16x256xf32>
    %29 = arith.maximumf %27, %28 : vector<16x256xf32>
    %30 = arith.truncf %29 : vector<16x256xf32> to vector<16x256xbf16>
    %31 = vector.extract_strided_slice %23 {offsets = [0, 256], sizes = [16, 128], strides = [1, 1]} : vector<16x384xf32> to vector<16x128xf32>
    %c0_18 = arith.constant 0 : index
    %c512 = arith.constant 512 : index
    %32 = vector.load %arg8[%c0_18, %c512] : memref<1x1536xf32, #tpu.memory_space<vmem>>, vector<1x128xf32>
    %33 = vector.broadcast %32 : vector<1x128xf32> to vector<16x128xf32>
    %34 = arith.addf %31, %33 : vector<16x128xf32>
    %cst_19 = arith.constant 0.000000e+00 : f32
    %35 = vector.broadcast %cst_19 : f32 to vector<16x128xf32>
    %36 = arith.maximumf %34, %35 : vector<16x128xf32>
    %c0_20 = arith.constant 0 : index
    %c1024 = arith.constant 1024 : index
    %37 = vector.load %arg8[%c0_20, %c1024] : memref<1x1536xf32, #tpu.memory_space<vmem>>, vector<1x128xf32>
    %38 = vector.broadcast %37 : vector<1x128xf32> to vector<16x128xf32>
    %39 = arith.mulf %36, %38 : vector<16x128xf32>
    %cst_21 = arith.constant dense<0.000000e+00> : vector<16xf32>
    %40 = vector.multi_reduction <add>, %39, %cst_21 [1] : vector<16x128xf32> to vector<16xf32>
    %41 = vector.shape_cast %40 : vector<16xf32> to vector<16x1xf32>
    %c0_22 = arith.constant 0 : index
    %c1408 = arith.constant 1408 : index
    %42 = vector.load %arg8[%c0_22, %c1408] : memref<1x1536xf32, #tpu.memory_space<vmem>>, vector<1x1xf32>
    %43 = vector.broadcast %42 : vector<1x1xf32> to vector<16x1xf32>
    %44 = arith.addf %41, %43 : vector<16x1xf32>
    %c0_23 = arith.constant 0 : index
    %c0_24 = arith.constant 0 : index
    %45 = vector.load %arg6[%c0_23, %c0_24] : memref<256x128xbf16, #tpu.memory_space<vmem>>, vector<256x128xbf16>
    %cst_25 = arith.constant dense<0.000000e+00> : vector<16x128xf32>
    %46 = tpu.matmul %30, %45, %cst_25 {dimension_numbers = #tpu.dot_dimension_numbers<[1], [0], [0], [1], [0, 0, 1, 1], [], []>} : vector<16x256xbf16>, vector<256x128xbf16>, vector<16x128xf32> -> vector<16x128xf32>
    %c0_26 = arith.constant 0 : index
    %c640 = arith.constant 640 : index
    %47 = vector.load %arg8[%c0_26, %c640] : memref<1x1536xf32, #tpu.memory_space<vmem>>, vector<1x128xf32>
    %48 = vector.broadcast %47 : vector<1x128xf32> to vector<16x128xf32>
    %49 = arith.addf %46, %48 : vector<16x128xf32>
    %cst_27 = arith.constant 0.000000e+00 : f32
    %50 = vector.broadcast %cst_27 : f32 to vector<16x128xf32>
    %51 = arith.maximumf %49, %50 : vector<16x128xf32>
    %52 = arith.truncf %51 : vector<16x128xf32> to vector<16x128xbf16>
    %c0_28 = arith.constant 0 : index
    %c0_29 = arith.constant 0 : index
    %53 = vector.load %arg7[%c0_28, %c0_29] : memref<128x256xbf16, #tpu.memory_space<vmem>>, vector<128x256xbf16>
    %cst_30 = arith.constant dense<0.000000e+00> : vector<16x256xf32>
    %54 = tpu.matmul %52, %53, %cst_30 {dimension_numbers = #tpu.dot_dimension_numbers<[1], [0], [0], [1], [0, 0, 1, 1], [], []>} : vector<16x128xbf16>, vector<128x256xbf16>, vector<16x256xf32> -> vector<16x256xf32>
    %c0_31 = arith.constant 0 : index
    %c768 = arith.constant 768 : index
    %55 = vector.load %arg8[%c0_31, %c768] : memref<1x1536xf32, #tpu.memory_space<vmem>>, vector<1x256xf32>
    %56 = vector.broadcast %55 : vector<1x256xf32> to vector<16x256xf32>
    %57 = arith.addf %54, %56 : vector<16x256xf32>
    %cst_32 = arith.constant 0.000000e+00 : f32
    %58 = vector.broadcast %cst_32 : f32 to vector<16x256xf32>
    %59 = arith.maximumf %57, %58 : vector<16x256xf32>
    %c0_33 = arith.constant 0 : index
    %c1152 = arith.constant 1152 : index
    %60 = vector.load %arg8[%c0_33, %c1152] : memref<1x1536xf32, #tpu.memory_space<vmem>>, vector<1x256xf32>
    %61 = vector.broadcast %60 : vector<1x256xf32> to vector<16x256xf32>
    %62 = arith.mulf %59, %61 : vector<16x256xf32>
    %cst_34 = arith.constant dense<0.000000e+00> : vector<16xf32>
    %63 = vector.multi_reduction <add>, %62, %cst_34 [1] : vector<16x256xf32> to vector<16xf32>
    %64 = vector.shape_cast %63 : vector<16xf32> to vector<16x1xf32>
    %c0_35 = arith.constant 0 : index
    %c1409 = arith.constant 1409 : index
    %65 = vector.load %arg8[%c0_35, %c1409] : memref<1x1536xf32, #tpu.memory_space<vmem>>, vector<1x1xf32>
    %66 = vector.broadcast %65 : vector<1x1xf32> to vector<16x1xf32>
    %67 = arith.addf %64, %66 : vector<16x1xf32>
    %68 = arith.mulf %67, %44 : vector<16x1xf32>
    %c0_36 = arith.constant 0 : index
    %c0_37 = arith.constant 0 : index
    %69 = vector.load %arg9[%c0_36, %c0_37] : memref<16x1xf32, #tpu.memory_space<vmem>>, vector<16x1xf32>
    tpu.vector_store %arg9[%c0_36, %c0_37], %68 {strides = array<i32>} : memref<16x1xf32, #tpu.memory_space<vmem>>, vector<16x1xf32>,
    return
  }
  func.func @transform_0(%arg0: i32) -> (i32, i32) {
    %c0_i32 = arith.constant 0 : i32
    %c0_i32_0 = arith.constant 0 : i32
    return %arg0, %c0_i32 : i32, i32
  }
  func.func @transform_1(%arg0: i32) -> (i32, i32) {
    %c0_i32 = arith.constant 0 : i32
    %c0_i32_0 = arith.constant 0 : i32
    return %arg0, %c0_i32 : i32, i32
  }
  func.func @transform_2(%arg0: i32) -> (i32, i32) {
    %c0_i32 = arith.constant 0 : i32
    %c0_i32_0 = arith.constant 0 : i32
    %c0_i32_1 = arith.constant 0 : i32
    return %c0_i32, %c0_i32_0 : i32, i32
  }
  func.func @transform_3(%arg0: i32) -> (i32, i32) {
    %c0_i32 = arith.constant 0 : i32
    %c0_i32_0 = arith.constant 0 : i32
    %c0_i32_1 = arith.constant 0 : i32
    return %c0_i32, %c0_i32_0 : i32, i32
  }
  func.func @transform_4(%arg0: i32) -> (i32, i32) {
    %c0_i32 = arith.constant 0 : i32
    %c0_i32_0 = arith.constant 0 : i32
    %c0_i32_1 = arith.constant 0 : i32
    return %c0_i32, %c0_i32_0 : i32, i32
  }
  func.func @transform_5(%arg0: i32) -> (i32, i32) {
    %c0_i32 = arith.constant 0 : i32
    %c0_i32_0 = arith.constant 0 : i32
    %c0_i32_1 = arith.constant 0 : i32
    return %c0_i32, %c0_i32_0 : i32, i32
  }
  func.func @transform_6(%arg0: i32) -> (i32, i32) {
    %c0_i32 = arith.constant 0 : i32
    %c0_i32_0 = arith.constant 0 : i32
    %c0_i32_1 = arith.constant 0 : i32
    return %c0_i32, %c0_i32_0 : i32, i32
  }
  func.func @transform_7(%arg0: i32) -> (i32, i32) {
    %c0_i32 = arith.constant 0 : i32
    %c0_i32_0 = arith.constant 0 : i32
    %c0_i32_1 = arith.constant 0 : i32
    return %c0_i32, %c0_i32_0 : i32, i32
  }
  func.func @transform_8(%arg0: i32) -> (i32, i32) {
    %c0_i32 = arith.constant 0 : i32
    %c0_i32_0 = arith.constant 0 : i32
    return %arg0, %c0_i32 : i32, i32
  }
}

</mosaic_0001>

<bundles_post_ra>
// kernel: squeeze.1
= control target key start
LH: loop header
LB: loop body
LE: loop exit
PB: predicated region body
PF: predicated region fallthrough
CT: control target
= control target key end

     0   :  { %vm7_vm0 = vcmask 23552   ;;  %s39_s0 = inlined_call_operand.vmem [shape: f32[6], index: 0, kind: input, shape index: {}]   ;;  %s40_s1 = inlined_call_operand.vmem [shape: f32[2,3], index: 1, kind: output, shape index: {}]  }
   0x1   :  { %v4_v0 = vld [vmem:[%s39_s0] sm:$0x1]  ;;  %s22_s0 = smov 125  }
   0x2   :  { %5 = vst [vmem:[#allocation1] sm:$0x1] %v4_v0 }
   0x9   :  { %v9_v1 = vld [vmem:[#allocation1] sm:$0x1]  }
   0xa   :  { %v6_v2 = vld [vmem:[#allocation1] sm:$0x1]   ;;  %10 = vrot.lane.b32.xlu0 %v9_v1, %s22_s0 }
   0xb   :  { %8 = vst.msk [vmem:[#allocation0] sm:$0x1] %vm7_vm0, %v6_v2  }
  0x7c   :  { %v11_v3 = vpop.permute.xlu0 %10  }
  0x7d   :  { %14 = vst.msk [vmem:[#allocation0 + $0x1] sm:$0x1] %vm7_vm0, %v11_v3  }
  0x84   :  { %v18_v4 = vld [vmem:[#allocation0] sm:$0x3] }
  0x85   :  { %20 = vst [vmem:[%s40_s1] sm:$0x3] %v18_v4 }

// kernel: _lambda_.1
= control target key start
LH: loop header
LB: loop body
LE: loop exit
PB: predicated region body
PF: predicated region fallthrough
CT: control target
= control target key end

     0   :  { %v1575_v1 = vmov 0.0   ;;  %vm207_vm0 = vcmask 621568   ;;  %vm211_vm1 = vcmask 1045504   ;;  %vm1576_vm2 = vmmov 0   ;;  %s1578_s24 = smov 1   ;;  %s2036_s2 = inlined_call_operand.vmem [shape: bf16[204,256], index: 2, kind: input, shape index: {}]   ;;  %s2037_s0 = inlined_call_operand.vmem [shape: bf16[16,204], index: 0, kind: input, shape index: {}]   ;;  %s2038_s3 = inlined_call_operand.vmem [shape: bf16[128,128], index: 3, kind: input, shape index: {}]   ;;  %s2039_s4 = inlined_call_operand.vmem [shape: bf16[256,384], index: 4, kind: input, shape index: {}]   ;;  %s2040_s7 = inlined_call_operand.vmem [shape: f32[1,1536], index: 7, kind: input, shape index: {}]   ;;  %s2041_s5 = inlined_call_operand.vmem [shape: bf16[256,128], index: 5, kind: input, shape index: {}]   ;;  %s2042_s1 = inlined_call_operand.vmem [shape: f32[16,128], index: 1, kind: input, shape index: {}]   ;;  %s2043_s6 = inlined_call_operand.vmem [shape: bf16[128,256], index: 6, kind: input, shape index: {}]   ;;  %s2044_s8 = inlined_call_operand.vmem [shape: f32[16,1], index: 8, kind: output, shape index: {}]  }
   0x1   :  { %v1421_v0 = vld [vmem:[%s2036_s2 + $0x4] ss:$8 sps:$4 sm:$0xff]   ;;  %1396 = vmatprep.subr.bf16.mxu1 %v1575_v1  ;;  %v1423_v2 = vld [vmem:[%s2036_s2] ss:$8 sps:$4 sm:$0xff]   ;;  %v1424_v3 = vld [vmem:[%s2036_s2 + $0x14] ss:$8 sps:$4 sm:$0xff]   ;;  %1412 = vmatprep.mubr.msk.bf16.mxu1 %vm1576_vm2, %v1575_v1  ;;  %v60_v51 = vlaneseq }
   0x2   :  { %218 = vmatprep.subr.bf16.mxu0 %v1421_v0  ;;  %v1426_v4 = vld [vmem:[%s2036_s2 + $0x10] ss:$8 sps:$4 sm:$0xff]   ;;  %v1427_v5 = vld [vmem:[%s2036_s2 + $0x24] ss:$8 sps:$4 sm:$0xff]   ;;  %v1429_v6 = vld [vmem:[%s2036_s2 + $0x20] ss:$8 sps:$4 sm:$0xff]  }
   0x3   :  { %219 = vmatpush1.bf16.msra.mxu0 %v1423_v2  ;;  %v1430_v7 = vld [vmem:[%s2036_s2 + $0x34] ss:$8 sps:$4 sm:$0xff]   ;;  %v1432_v8 = vld [vmem:[%s2036_s2 + $0x30] ss:$8 sps:$4 sm:$0xff]   ;;  %v1433_v9 = vld [vmem:[%s2036_s2 + $0x44] ss:$8 sps:$4 sm:$0xff]  }
   0x4   :  { %220 = vmatprep.subr.bf16.mxu0 %v1424_v3  ;;  %v1435_v10 = vld [vmem:[%s2036_s2 + $0x40] ss:$8 sps:$4 sm:$0xff]   ;;  %v1436_v11 = vld [vmem:[%s2036_s2 + $0x54] ss:$8 sps:$4 sm:$0xff]   ;;  %v1438_v12 = vld [vmem:[%s2036_s2 + $0x50] ss:$8 sps:$4 sm:$0xff]  }
   0x5   :  { %v1462_v13 = vld [vmem:[%s2037_s0 + $0x4] ss:$8 sps:$4 sm:$0xff]   ;;  %v1441_v17 = vld [vmem:[%s2036_s2 + $0x60] ss:$8 sps:$4 sm:$0xff]   ;;  %v1442_v18 = vld [vmem:[%s2036_s2 + $0x74] ss:$8 sps:$4 sm:$0xff]  }
   0x6   :  { %v1463_v14 = vld [vmem:[%s2038_s3] sm:$0xff]   ;;  %1250 = vmatprep.mubr.msk.bf16.mxu0 %vm207_vm0, %v1462_v13  ;;  %v1464_v16 = vld [vmem:[%s2038_s3 + $0x8] sm:$0xff]   ;;  %v1465_v19 = vld [vmem:[%s2038_s3 + $0x10] sm:$0xff]   ;;  %v61_v52 = vshrl.u32 %v60_v51, 7  ;;  %vm1214_vm3 = vcmask 7168  }
   0x7   :  { %221 = vmatpush1.bf16.msra.mxu0 %v1426_v4  ;;  %v1439_v15 = vld [vmem:[%s2036_s2 + $0x64] ss:$8 sps:$4 sm:$0xff]   ;;  %1397 = vmatpush3.bf16.msra.mxu1 %v1463_v14  ;;  %v1444_v20 = vld [vmem:[%s2036_s2 + $0x70] ss:$8 sps:$4 sm:$0xff]   ;;  %v1447_v23 = vld [vmem:[%s2036_s2 + $0x80] ss:$8 sps:$4 sm:$0xff]  }
   0x8   :  { %222 = vmatprep.subr.bf16.mxu0 %v1427_v5  ;;  %1398 = vmatprep.subr.bf16.mxu1 %v1575_v1  ;;  %v1445_v21 = vld [vmem:[%s2036_s2 + $0x84] ss:$8 sps:$4 sm:$0xff]   ;;  %v1466_v22 = vld [vmem:[%s2038_s3 + $0x18] sm:$0xff]   ;;  %v1453_v29 = vld [vmem:[%s2036_s2 + $0xa0] ss:$8 sps:$4 sm:$0xff]   ;;  %v1781_v53 = vsub.s32 0, %v61_v52 }
   0x9   :  { %v1448_v24 = vld [vmem:[%s2036_s2 + $0x94] ss:$8 sps:$4 sm:$0xff]   ;;  %v1467_v25 = vld [vmem:[%s2038_s3 + $0x20] sm:$0xff]   ;;  %v1450_v26 = vld [vmem:[%s2036_s2 + $0x90] ss:$8 sps:$4 sm:$0xff]   ;;  %v1786_v55 = vsub.s32 1, %v61_v52 }
   0xa   :  { %v1451_v27 = vld [vmem:[%s2036_s2 + $0xa4] ss:$8 sps:$4 sm:$0xff]   ;;  %v1454_v30 = vld [vmem:[%s2036_s2 + $0xb4] ss:$8 sps:$4 sm:$0xff]   ;;  %v1456_v31 = vld [vmem:[%s2036_s2 + $0xb0] ss:$8 sps:$4 sm:$0xff]  }
   0xb   :  { %223 = vmatpush1.bf16.msra.mxu0 %v1429_v6  ;;  %1399 = vmatpush3.bf16.msra.mxu1 %v1464_v16  ;;  %v1468_v28 = vld [vmem:[%s2038_s3 + $0x28] sm:$0xff]   ;;  %v1469_v36 = vld [vmem:[%s2038_s3 + $0x30] sm:$0xff]   ;;  %v1470_v37 = vld [vmem:[%s2038_s3 + $0x38] sm:$0xff]  }
   0xc   :  { %224 = vmatprep.subr.bf16.mxu0 %v1430_v7  ;;  %1400 = vmatprep.subr.bf16.mxu1 %v1575_v1  ;;  %v1457_v32 = vld [vmem:[%s2036_s2 + $0xc4] ss:$8 sps:$4 sm:$0x3f]   ;;  %v1459_v33 = vld [vmem:[%s2036_s2 + $0xc0] ss:$8 sps:$4 sm:$0x3f]  }
   0xd   :  { %v213_v34 = vsel %vm211_vm1, %v1459_v33, 0  ;;  %v1460_v35 = vld [vmem:[%s2037_s0] ss:$8 sps:$4 sm:$0xff]   ;;  %v1473_v38 = vld [vmem:[%s2039_s4 + $0x4] ss:$12 sps:$4 sm:$0xff]  }
   0xe   :  { %v1498_v39 = vld [vmem:[%s2039_s4 + $0xc8] ss:$12 sps:$4 sm:$0xff]   ;;  %v1503_v41 = vld [vmem:[%s2039_s4 + $0xe0] ss:$12 sps:$4 sm:$0xff]   ;;  %v1508_v43 = vld [vmem:[%s2039_s4 + $0xf8] ss:$12 sps:$4 sm:$0xff]  }
   0xf   :  { %225 = vmatpush1.bf16.msra.mxu0 %v1432_v8  ;;  %1401 = vmatpush3.bf16.msra.mxu1 %v1465_v19  ;;  %v1499_v40 = vld [vmem:[%s2039_s4 + $0x8] ss:$12 sps:$4 sm:$0xff]   ;;  %v1504_v42 = vld [vmem:[%s2039_s4 + $0x20] ss:$12 sps:$4 sm:$0xff]   ;;  %v1509_v44 = vld [vmem:[%s2039_s4 + $0x38] ss:$12 sps:$4 sm:$0xff]  }
  0x10   :  { %226 = vmatprep.subr.bf16.mxu0 %v1433_v9  ;;  %1402 = vmatprep.subr.bf16.mxu1 %v1575_v1  ;;  %v1513_v45 = vld [vmem:[%s2039_s4 + $0x110] ss:$12 sps:$4 sm:$0xff]   ;;  %v1518_v47 = vld [vmem:[%s2039_s4 + $0x128] ss:$12 sps:$4 sm:$0xff]   ;;  %v1523_v49 = vld [vmem:[%s2039_s4 + $0x140] ss:$12 sps:$4 sm:$0xff]  }
  0x11   :  { %v1514_v46 = vld [vmem:[%s2039_s4 + $0x50] ss:$12 sps:$4 sm:$0xff]   ;;  %v1519_v48 = vld [vmem:[%s2039_s4 + $0x68] ss:$12 sps:$4 sm:$0xff]   ;;  %v1524_v50 = vld [vmem:[%s2039_s4 + $0x80] ss:$12 sps:$4 sm:$0xff]  }
  0x12   :  { %v58_v54 = vld [vmem:[%s2040_s7] sm:$0x3]  ;;  %v1476_v9 = vld [vmem:[%s2039_s4 + $0x1c] ss:$12 sps:$4 sm:$0xff]   ;;  %v1482_v13 = vld [vmem:[%s2039_s4 + $0x4c] ss:$12 sps:$4 sm:$0xff]  }
  0x13   :  { %227 = vmatpush1.bf16.msra.mxu0 %v1435_v10  ;;  %1403 = vmatpush3.bf16.msra.mxu1 %v1466_v22  ;;  %v63_v56 = vrot.slane %v58_v54, %v1781_v53  ;;  %v67_v57 = vrot.slane %v58_v54, %v1786_v55  ;;  %v1471_v7 = vld [vmem:[%s2039_s4] ss:$12 sps:$4 sm:$0xff]   ;;  %v1474_v10 = vld [vmem:[%s2039_s4 + $0x18] ss:$12 sps:$4 sm:$0xff]   ;;  %v1480_v14 = vld [vmem:[%s2039_s4 + $0x48] ss:$12 sps:$4 sm:$0xff]  }
  0x14   :  { %228 = vmatprep.subr.bf16.mxu0 %v1436_v11  ;;  %1404 = vmatprep.subr.bf16.mxu1 %v1575_v1  ;;  %v1479_v11 = vld [vmem:[%s2039_s4 + $0x34] ss:$12 sps:$4 sm:$0xff]   ;;  %v1522_v33 = vld [vmem:[%s2039_s4 + $0x13c] ss:$12 sps:$4 sm:$0xff]  }
  0x15   :  { %v1483_v16 = vld [vmem:[%s2039_s4 + $0x60] ss:$12 sps:$4 sm:$0xff]   ;;  %v1492_v22 = vld [vmem:[%s2039_s4 + $0xa8] ss:$12 sps:$4 sm:$0xff]  }
  0x16   :  { %v1491_v19 = vld [vmem:[%s2039_s4 + $0x94] ss:$12 sps:$4 sm:$0xff]  }
  0x17   :  { %229 = vmatpush1.bf16.msra.mxu0 %v1438_v12  ;;  %1405 = vmatpush3.bf16.msra.mxu1 %v1467_v25  ;;  %v1477_v12 = vld [vmem:[%s2039_s4 + $0x30] ss:$12 sps:$4 sm:$0xff]  }
  0x18   :  { %230 = vmatprep.subr.bf16.mxu0 %v1439_v15  ;;  %1406 = vmatprep.subr.bf16.mxu1 %v1575_v1  ;;  %v1485_v15 = vld [vmem:[%s2039_s4 + $0x64] ss:$12 sps:$4 sm:$0xff]   ;;  %v1502_v25 = vld [vmem:[%s2039_s4 + $0xdc] ss:$12 sps:$4 sm:$0xff]  }
  0x1b   :  { %231 = vmatpush1.bf16.msra.mxu0 %v1441_v17  ;;  %1407 = vmatpush3.bf16.msra.mxu1 %v1468_v28  ;;  %v1488_v17 = vld [vmem:[%s2039_s4 + $0x7c] ss:$12 sps:$4 sm:$0xff]  }
  0x1c   :  { %232 = vmatprep.subr.bf16.mxu0 %v1442_v18  ;;  %1408 = vmatprep.subr.bf16.mxu1 %v1575_v1  ;;  %v1486_v18 = vld [vmem:[%s2039_s4 + $0x78] ss:$12 sps:$4 sm:$0xff]   ;;  %v1505_v28 = vld [vmem:[%s2039_s4 + $0xf0] ss:$12 sps:$4 sm:$0xff]  }
  0x1f   :  { %233 = vmatpush1.bf16.msra.mxu0 %v1444_v20  ;;  %1409 = vmatpush3.bf16.msra.mxu1 %v1469_v36  ;;  %v1489_v20 = vld [vmem:[%s2039_s4 + $0x90] ss:$12 sps:$4 sm:$0xff]   ;;  %v1528_v36 = vld [vmem:[%s2039_s4 + $0x158] ss:$12 sps:$4 sm:$0xff]  }
  0x20   :  { %234 = vmatprep.subr.bf16.mxu0 %v1445_v21  ;;  %1410 = vmatprep.subr.bf16.mxu1 %v1575_v1  ;;  %v1494_v21 = vld [vmem:[%s2039_s4 + $0xac] ss:$12 sps:$4 sm:$0xff]  }
  0x23   :  { %235 = vmatpush1.bf16.msra.mxu0 %v1447_v23  ;;  %1411 = vmatpush3.bf16.msra.mxu1 %v1470_v37  ;;  %v1497_v23 = vld [vmem:[%s2039_s4 + $0xc4] ss:$12 sps:$4 sm:$0xff]  }
  0x24   :  { %236 = vmatprep.subr.bf16.mxu0 %v1448_v24  ;;  %699 = vmatprep.subr.bf16.mxu1 %v1473_v38  ;;  %v1495_v24 = vld [vmem:[%s2039_s4 + $0xc0] ss:$12 sps:$4 sm:$0xff]   ;;  %v1525_v37 = vld [vmem:[%s2039_s4 + $0x150] ss:$12 sps:$4 sm:$0xff]   ;;  %v1529_v38 = vld [vmem:[%s2039_s4 + $0x98] ss:$12 sps:$4 sm:$0xff]  }
  0x27   :  { %237 = vmatpush1.bf16.msra.mxu0 %v1450_v26  ;;  %v1500_v26 = vld [vmem:[%s2039_s4 + $0xd8] ss:$12 sps:$4 sm:$0xff]  }
  0x28   :  { %238 = vmatprep.subr.bf16.mxu0 %v1451_v27  ;;  %v1507_v27 = vld [vmem:[%s2039_s4 + $0xf4] ss:$12 sps:$4 sm:$0xff]  }
  0x2b   :  { %239 = vmatpush1.bf16.msra.mxu0 %v1453_v29  ;;  %v1512_v29 = vld [vmem:[%s2039_s4 + $0x10c] ss:$12 sps:$4 sm:$0xff]  }
  0x2c   :  { %240 = vmatprep.subr.bf16.mxu0 %v1454_v30  ;;  %v1510_v30 = vld [vmem:[%s2039_s4 + $0x108] ss:$12 sps:$4 sm:$0xff]  }
  0x2f   :  { %241 = vmatpush1.bf16.msra.mxu0 %v1456_v31  ;;  %v1517_v31 = vld [vmem:[%s2039_s4 + $0x124] ss:$12 sps:$4 sm:$0xff]  }
  0x30   :  { %1249 = vmatprep.subr.msk.bf16.mxu0 %vm211_vm1, %v1457_v32  ;;  %v1515_v32 = vld [vmem:[%s2039_s4 + $0x120] ss:$12 sps:$4 sm:$0xff]  }
  0x33   :  { %243 = vmatpush1.bf16.msra.mxu0 %v213_v34  ;;  %v1520_v34 = vld [vmem:[%s2039_s4 + $0x138] ss:$12 sps:$4 sm:$0xff]  }
  0x34   :  { %1352 = vmatprep.subr.bf16.mxu0 %v1498_v39  ;;  %v1532_v39 = vld [vmem:[%s2039_s4 + $0x16c] ss:$12 sps:$4 sm:$0xff]  }
  0x36   :  { %251 = vmatmul.mubr.bf16.vlgmr.msra.gmra.mrb[0].mxu0 %v1460_v35  ;;  %v1527_v35 = vld [vmem:[%s2039_s4 + $0x154] ss:$12 sps:$4 sm:$0xff]  }
  0x37   :  { %1353 = vmatpush3.bf16.msra.mxu0 %v1499_v40  ;;  %v1533_v40 = vld [vmem:[%s2039_s4 + $0x170] ss:$12 sps:$4 sm:$0xff]  }
  0x38   :  { %1354 = vmatprep.subr.bf16.mxu0 %v1503_v41  ;;  %v1530_v41 = vld [vmem:[%s2039_s4 + $0x168] ss:$12 sps:$4 sm:$0xff]  }
  0x3b   :  { %1355 = vmatpush3.bf16.msra.mxu0 %v1504_v42  ;;  %v1534_v42 = vld [vmem:[%s2039_s4 + $0xb0] ss:$12 sps:$4 sm:$0xff]  }
  0x3c   :  { %1356 = vmatprep.subr.bf16.mxu0 %v1508_v43  ;;  %v1535_v43 = vld [vmem:[%s2041_s5 + $0x40] sm:$0xff]  }
  0x3f   :  { %1357 = vmatpush3.bf16.msra.mxu0 %v1509_v44  ;;  %v267_v44 = vld [vmem:[%s2042_s1] sm:$0xff] }
  0x40   :  { %1358 = vmatprep.subr.bf16.mxu0 %v1513_v45 }
  0x43   :  { %1359 = vmatpush3.bf16.msra.mxu0 %v1514_v46  ;;  %v268_v46 = vld [vmem:[%s2042_s1 + $0x8] sm:$0xff] }
  0x44   :  { %1360 = vmatprep.subr.bf16.mxu0 %v1518_v47 }
  0x47   :  { %1361 = vmatpush3.bf16.msra.mxu0 %v1519_v48 }
  0x48   :  { %1362 = vmatprep.subr.bf16.mxu0 %v1523_v49 }
  0x4b   :  { %1363 = vmatpush3.bf16.msra.mxu0 %v1524_v50 }
  0x4c   :  { %1364 = vmatprep.subr.bf16.mxu0 %v1528_v36 }
  0x4f   :  { %1365 = vmatpush3.bf16.msra.mxu0 %v1529_v38 }
  0x50   :  { %1366 = vmatprep.subr.bf16.mxu0 %v1533_v40  ;;  %v1553_v40 = vld [vmem:[%s2043_s6 + $0x4] ss:$8 sps:$4 sm:$0xff]  }
  0x53   :  { %1367 = vmatpush3.bf16.msra.mxu0 %v1534_v42  ;;  %v1554_v42 = vld [vmem:[%s2043_s6 + $0x10] ss:$8 sps:$4 sm:$0xff]  }
  0x54   :  { %1374 = vmatprep.subr.bf16.mxu0 %v1535_v43  ;;  %v1559_v43 = vld [vmem:[%s2043_s6 + $0x24] ss:$8 sps:$4 sm:$0xff]  }
 0x109   :  { %v252_v58 = vpop.f32.mrb[0].mxu0 }
 0x10a   :  { %v253_v59 = vadd.f32 %v252_v58, %v63_v56  ;;  %v254_v60 = vpop.f32.mrb[1].mxu0  ;;  %v1537_v58 = vld [vmem:[%s2041_s5 + $0x48] sm:$0xff]  }
 0x10b   :  { %v255_v61 = vadd.f32 %v254_v60, %v67_v57  ;;  %v256_v62 = vpop.f32.mrb[2].mxu0  ;;  %v1539_v60 = vld [vmem:[%s2041_s5 + $0x50] sm:$0xff]  }
 0x10c   :  { %v257_v63 = vadd.f32 %v256_v62, %v63_v56  ;;  %v258_v0 = vpop.f32.mrb[3].mxu0  ;;  %v261_v2 = vmax.f32 %v253_v59, 0.0  ;;  %v1538_v59 = vld [vmem:[%s2041_s5 + $0x8] sm:$0xff]   ;;  %v1541_v62 = vld [vmem:[%s2041_s5 + $0x58] sm:$0xff]  }
 0x10d   :  { %v259_v1 = vadd.f32 %v258_v0, %v67_v57  ;;  %v264_v4 = vmax.f32 %v255_v61, 0.0  ;;  %v1536_v57 = vld [vmem:[%s2041_s5] sm:$0xff]   ;;  %v1540_v61 = vld [vmem:[%s2041_s5 + $0x10] sm:$0xff]  }
 0x10e   :  { %v262_v3 = vmax.f32 %v257_v63, 0.0  ;;  %v1542_v63 = vld [vmem:[%s2041_s5 + $0x18] sm:$0xff]   ;;  %v1543_v0 = vld [vmem:[%s2041_s5 + $0x60] sm:$0xff]  }
 0x10f   :  { %v265_v5 = vmax.f32 %v259_v1, 0.0  ;;  %v1544_v1 = vld [vmem:[%s2041_s5 + $0x20] sm:$0xff]  }
 0x110   :  { %v1790_v6 = vpack.c.bf16 %v262_v3, %v261_v2  ;;  %v1545_v2 = vld [vmem:[%s2041_s5 + $0x68] sm:$0xff]  }
 0x111   :  { %v266_v8 = vpack.c.bf16 %v265_v5, %v264_v4  ;;  %v1546_v3 = vld [vmem:[%s2041_s5 + $0x28] sm:$0xff]   ;;  %v1547_v4 = vld [vmem:[%s2041_s5 + $0x70] sm:$0xff]  }
 0x112   :  { %v1548_v5 = vld [vmem:[%s2041_s5 + $0x30] sm:$0xff]  }
 0x113   :  { %1413 = vmatmul.mubr.bf16.vlgmr.msra.gmra.mrb[0].mxu1 %v266_v8  ;;  %v783_v8 = vld [vmem:[%s2040_s7 + $0x2] sm:$0x3] }
 0x114   :  { %700 = vmatpush1.bf16.msra.mxu1 %v1471_v7  ;;  %v1550_v7 = vld [vmem:[%s2041_s5 + $0x38] sm:$0xff]  }
 0x115   :  { %701 = vmatprep.subr.bf16.mxu1 %v1476_v9  ;;  %v788_v9 = vrot.slane %v783_v8, %v1781_v53 }
 0x118   :  { %702 = vmatpush1.bf16.msra.mxu1 %v1474_v10  ;;  %v792_v10 = vrot.slane %v783_v8, %v1786_v55 }
 0x119   :  { %703 = vmatprep.subr.bf16.mxu1 %v1479_v11 }
 0x11c   :  { %704 = vmatpush1.bf16.msra.mxu1 %v1477_v12 }
 0x11d   :  { %705 = vmatprep.subr.bf16.mxu1 %v1482_v13 }
 0x120   :  { %706 = vmatpush1.bf16.msra.mxu1 %v1480_v14 }
 0x121   :  { %707 = vmatprep.subr.bf16.mxu1 %v1485_v15 }
 0x124   :  { %708 = vmatpush1.bf16.msra.mxu1 %v1483_v16  ;;  %v1307_v16 = vld [vmem:[%s2040_s7 + $0x4] ss:$0 sm:$0xff] }
 0x125   :  { %709 = vmatprep.subr.bf16.mxu1 %v1488_v17 }
 0x128   :  { %710 = vmatpush1.bf16.msra.mxu1 %v1486_v18 }
 0x129   :  { %711 = vmatprep.subr.bf16.mxu1 %v1491_v19 }
 0x12c   :  { %712 = vmatpush1.bf16.msra.mxu1 %v1489_v20 }
 0x12d   :  { %713 = vmatprep.subr.bf16.mxu1 %v1494_v21 }
 0x130   :  { %714 = vmatpush1.bf16.msra.mxu1 %v1492_v22 }
 0x131   :  { %715 = vmatprep.subr.bf16.mxu1 %v1497_v23 }
 0x134   :  { %716 = vmatpush1.bf16.msra.mxu1 %v1495_v24 }
 0x135   :  { %717 = vmatprep.subr.bf16.mxu1 %v1502_v25 }
 0x138   :  { %718 = vmatpush1.bf16.msra.mxu1 %v1500_v26 }
 0x139   :  { %719 = vmatprep.subr.bf16.mxu1 %v1507_v27 }
 0x13c   :  { %720 = vmatpush1.bf16.msra.mxu1 %v1505_v28 }
 0x13d   :  { %721 = vmatprep.subr.bf16.mxu1 %v1512_v29  ;;  %v1308_v29 = vld [vmem:[%s2040_s7 + $0x8] ss:$0 sm:$0xff] }
 0x140   :  { %722 = vmatpush1.bf16.msra.mxu1 %v1510_v30 }
 0x141   :  { %723 = vmatprep.subr.bf16.mxu1 %v1517_v31 }
 0x144   :  { %724 = vmatpush1.bf16.msra.mxu1 %v1515_v32 }
 0x145   :  { %725 = vmatprep.subr.bf16.mxu1 %v1522_v33 }
 0x148   :  { %726 = vmatpush1.bf16.msra.mxu1 %v1520_v34 }
 0x149   :  { %727 = vmatprep.subr.bf16.mxu1 %v1527_v35 }
 0x14c   :  { %728 = vmatpush1.bf16.msra.mxu1 %v1525_v37 }
 0x14d   :  { %729 = vmatprep.subr.bf16.mxu1 %v1532_v39  ;;  %v1551_v39 = vld [vmem:[%s2043_s6] ss:$8 sps:$4 sm:$0xff]  }
 0x150   :  { %730 = vmatpush1.bf16.msra.mxu1 %v1530_v41  ;;  %v1556_v41 = vld [vmem:[%s2043_s6 + $0x14] ss:$8 sps:$4 sm:$0xff]  }
 0x151   :  { %1125 = vmatprep.subr.bf16.mxu1 %v1553_v40 }
 0x1e6   :  { %v367_v45 = vpop.f32.mrb[0].mxu1 }
 0x1e7   :  { %v374_v47 = vadd.f32 %v367_v45, %v267_v44  ;;  %v1414_v48 = vpop.f32.mrb[1].mxu1  ;;  %v1557_v44 = vld [vmem:[%s2043_s6 + $0x20] ss:$8 sps:$4 sm:$0xff]   ;;  %v1562_v45 = vld [vmem:[%s2043_s6 + $0x34] ss:$8 sps:$4 sm:$0xff]  }
 0x1e8   :  { %v370_v49 = vpop.f32.mrb[2].mxu1  ;;  %v1563_v48 = vld [vmem:[%s2043_s6 + $0x40] ss:$8 sps:$4 sm:$0xff]  }
 0x1e9   :  { %v375_v50 = vadd.f32 %v370_v49, %v268_v46  ;;  %v1415_v51 = vpop.f32.mrb[3].mxu1  ;;  %v376_v52 = vmax.f32 %v374_v47, 0.0  ;;  %v1560_v46 = vld [vmem:[%s2043_s6 + $0x30] ss:$8 sps:$4 sm:$0xff]   ;;  %v1565_v47 = vld [vmem:[%s2043_s6 + $0x44] ss:$8 sps:$4 sm:$0xff]  }
 0x1ea   :  { %v1568_v49 = vld [vmem:[%s2043_s6 + $0x54] ss:$8 sps:$4 sm:$0xff]   ;;  %v1571_v51 = vld [vmem:[%s2043_s6 + $0x64] ss:$8 sps:$4 sm:$0xff]  }
 0x1eb   :  { %v377_v54 = vmax.f32 %v375_v50, 0.0  ;;  %v1566_v50 = vld [vmem:[%s2043_s6 + $0x50] ss:$8 sps:$4 sm:$0xff]  }
 0x1ed   :  { %v378_v56 = vpack.c.bf16 %v377_v54, %v376_v52  ;;  %v1569_v52 = vld [vmem:[%s2043_s6 + $0x60] ss:$8 sps:$4 sm:$0xff]   ;;  %v1574_v54 = vld [vmem:[%s2043_s6 + $0x74] ss:$8 sps:$4 sm:$0xff]  }
 0x1ef   :  { %731 = vmatprep.mubr.bf16.mxu1 %v378_v56  ;;  %774 = vmatprep.mubr.bf16.mxu0 %v378_v56  ;;  %v1572_v56 = vld [vmem:[%s2043_s6 + $0x70] ss:$8 sps:$4 sm:$0xff]  }
 0x1f0   :  { %732 = vmatmul.mubr.bf16.vlgmr.msra.gmra.mrb[4].mxu1 %v1790_v6  ;;  %775 = vmatmul.mubr.bf16.vlgmr.msra.gmra.mrb[4].mxu0 %v1790_v6  ;;  %v1549_v6 = vld [vmem:[%s2041_s5 + $0x78] sm:$0xff]  }
 0x1f1   :  { %1375 = vmatpush3.bf16.msra.mxu0 %v1536_v57  ;;  %1126 = vmatpush1.bf16.msra.mxu1 %v1551_v39  ;;  %v1577_v57 = vmov 0  }
 0x1f2   :  { %1376 = vmatprep.subr.bf16.mxu0 %v1537_v58  ;;  %1127 = vmatprep.subr.bf16.mxu1 %v1556_v41  ;;  %v1309_v58 = vld [vmem:[%s2040_s7 + $0xb] ss:$0 sm:$0xff] }
 0x1f3   :  { %1157 = vmatprep.mubr.bf16.mxu1 %v1577_v57 }
 0x1f5   :  { %1377 = vmatpush3.bf16.msra.mxu0 %v1538_v59  ;;  %1128 = vmatpush1.bf16.msra.mxu1 %v1554_v42 }
 0x1f6   :  { %1378 = vmatprep.subr.bf16.mxu0 %v1539_v60  ;;  %1129 = vmatprep.subr.bf16.mxu1 %v1559_v43 }
 0x1f9   :  { %1379 = vmatpush3.bf16.msra.mxu0 %v1540_v61  ;;  %1130 = vmatpush1.bf16.msra.mxu1 %v1557_v44 }
 0x1fa   :  { %1380 = vmatprep.subr.bf16.mxu0 %v1541_v62  ;;  %1131 = vmatprep.subr.bf16.mxu1 %v1562_v45  ;;  %v1310_v62 = vld [vmem:[%s2040_s7 + $0x5] ss:$0 sm:$0xff] }
 0x1fd   :  { %1381 = vmatpush3.bf16.msra.mxu0 %v1542_v63  ;;  %1132 = vmatpush1.bf16.msra.mxu1 %v1560_v46 }
 0x1fe   :  { %1382 = vmatprep.subr.bf16.mxu0 %v1543_v0  ;;  %1133 = vmatprep.subr.bf16.mxu1 %v1565_v47 }
 0x201   :  { %1383 = vmatpush3.bf16.msra.mxu0 %v1544_v1  ;;  %1134 = vmatpush1.bf16.msra.mxu1 %v1563_v48 }
 0x202   :  { %1384 = vmatprep.subr.bf16.mxu0 %v1545_v2  ;;  %1135 = vmatprep.subr.bf16.mxu1 %v1568_v49 }
 0x205   :  { %1385 = vmatpush3.bf16.msra.mxu0 %v1546_v3  ;;  %1136 = vmatpush1.bf16.msra.mxu1 %v1566_v50 }
 0x206   :  { %1386 = vmatprep.subr.bf16.mxu0 %v1547_v4  ;;  %1137 = vmatprep.subr.bf16.mxu1 %v1571_v51 }
 0x209   :  { %1387 = vmatpush3.bf16.msra.mxu0 %v1548_v5  ;;  %1138 = vmatpush1.bf16.msra.mxu1 %v1569_v52 }
 0x20a   :  { %1388 = vmatprep.subr.bf16.mxu0 %v1549_v6  ;;  %1139 = vmatprep.subr.bf16.mxu1 %v1574_v54 }
 0x20d   :  { %1389 = vmatpush3.bf16.msra.mxu0 %v1550_v7  ;;  %1140 = vmatpush1.bf16.msra.mxu1 %v1572_v56 }
 0x2c3   :  { %v733_v11 = vpop.f32.mrb[4].mxu1  ;;  %v1368_v12 = vpop.f32.mrb[4].mxu0 }
 0x2c4   :  { %v795_v13 = vadd.f32 %v788_v9, %v733_v11  ;;  %v735_v14 = vpop.f32.mrb[5].mxu1  ;;  %v1369_v15 = vpop.f32.mrb[5].mxu0 }
 0x2c5   :  { %v796_v17 = vadd.f32 %v792_v10, %v735_v14  ;;  %v1370_v18 = vadd.f32 %v1369_v15, %v1368_v12  ;;  %v737_v19 = vpop.f32.mrb[6].mxu1  ;;  %v1371_v20 = vpop.f32.mrb[6].mxu0  ;;  %v1172_v12 = vld [vmem:[%s2040_s7 + $0x9] sm:$0x3] }
 0x2c6   :  { %v797_v21 = vadd.f32 %v788_v9, %v737_v19  ;;  %v739_v22 = vpop.f32.mrb[7].mxu1  ;;  %v1372_v23 = vpop.f32.mrb[7].mxu0  ;;  %v799_v27 = vmax.f32 %v795_v13, 0.0  ;;  %v1033_v9 = vld [vmem:[%s2040_s7 + $0x6] sm:$0x3]  ;;  %v1181_v19 = vrot.slane %v1172_v12, %v1786_v55  ;;  %s1579_s7 = smov 127  }
 0x2c7   :  { %v798_v24 = vadd.f32 %v792_v10, %v739_v22  ;;  %v1373_v25 = vadd.f32 %v1372_v23, %v1371_v20  ;;  %v812_v26 = vadd.f32 %v1370_v18, %v1307_v16  ;;  %v800_v30 = vmax.f32 %v796_v17, 0.0 }
 0x2c8   :  { %v801_v28 = vmax.f32 %v797_v21, 0.0  ;;  %v1038_v10 = vrot.slane %v1033_v9, %v1781_v53  ;;  %v1042_v11 = vrot.slane %v1033_v9, %v1786_v55 }
 0x2c9   :  { %v802_v31 = vmax.f32 %v798_v24, 0.0  ;;  %v813_v32 = vadd.f32 %v1373_v25, %v1307_v16  ;;  %v814_v33 = vmax.f32 %v812_v26, 0.0  ;;  %v1177_v16 = vrot.slane %v1172_v12, %v1781_v53 }
 0x2ca   :  { %v803_v34 = vpack.c.bf16 %v801_v28, %v799_v27 }
 0x2cb   :  { %v804_v35 = vpack.c.bf16 %v802_v31, %v800_v30  ;;  %v815_v36 = vmax.f32 %v813_v32, 0.0  ;;  %v823_v37 = vmul.f32 %v1308_v29, %v814_v33 }
 0x2cd   :  { %825 = vadd.xlane.f32.xlu0 %v823_v37  ;;  %1005 = vmatprep.mubr.bf16.mxu0 %v804_v35  ;;  %v824_v38 = vmul.f32 %v1308_v29, %v815_v36 }
 0x2ce   :  { %1006 = vmatmul.mubr.bf16.vlgmr.msra.gmra.mrb[8].mxu0 %v803_v34 }
 0x2d1   :  { %827 = vadd.xlane.f32.xlu0 %v824_v38 }
 0x35a   :  { %v826_v59 = vpop.xlane.xlu0 %825 }
 0x35b   :  { %v836_v60 = vadd.f32 %v1309_v58, %v826_v59 }
 0x35d   :  { %1198 = vrot.lane.b32.xlu0 %v836_v60, %s1578_s24 }
 0x35e   :  { %v828_v53 = vpop.xlane.xlu0 %827 }
 0x35f   :  { %v837_v33 = vadd.f32 %v1309_v58, %v828_v53 }
 0x3a1   :  { %v1390_v61 = vpop.f32.mrb[8].mxu0 }
 0x3a2   :  { %v1391_v63 = vpop.f32.mrb[9].mxu0 }
 0x3a3   :  { %v1392_v0 = vadd.f32 %v1391_v63, %v1390_v61  ;;  %v1393_v1 = vpop.f32.mrb[10].mxu0 }
 0x3a4   :  { %v1394_v2 = vpop.f32.mrb[11].mxu0 }
 0x3a5   :  { %v1008_v3 = vadd.f32 %v1392_v0, %v1310_v62  ;;  %v1395_v4 = vadd.f32 %v1394_v2, %v1393_v1 }
 0x3a7   :  { %v1011_v5 = vadd.f32 %v1395_v4, %v1310_v62  ;;  %v1014_v6 = vmax.f32 %v1008_v3, 0.0 }
 0x3a9   :  { %v1015_v7 = vmax.f32 %v1011_v5, 0.0 }
 0x3ab   :  { %v1016_v8 = vpack.c.bf16 %v1015_v7, %v1014_v6 }
 0x3ad   :  { %1158 = vmatmul.mubr.bf16.vlgmr.msra.gmra.mrb[8].mxu1 %v1016_v8 }
 0x3cf   :  { %v1199_v35 = vpop.permute.xlu0 %1198 }
 0x480   :  { %v1159_v13 = vpop.f32.mrb[8].mxu1 }
 0x481   :  { %v1160_v14 = vadd.f32 %v1159_v13, %v1038_v10  ;;  %v1161_v15 = vpop.f32.mrb[9].mxu1 }
 0x482   :  { %v1162_v17 = vadd.f32 %v1161_v15, %v1042_v11  ;;  %v1163_v18 = vpop.f32.mrb[10].mxu1 }
 0x483   :  { %v1168_v20 = vmax.f32 %v1160_v14, 0.0  ;;  %v1164_v21 = vadd.f32 %v1163_v18, %v1038_v10  ;;  %v1165_v22 = vpop.f32.mrb[11].mxu1 }
 0x484   :  { %v1169_v23 = vmax.f32 %v1162_v17, 0.0  ;;  %v1166_v24 = vadd.f32 %v1165_v22, %v1042_v11 }
 0x485   :  { %v1170_v25 = vmax.f32 %v1164_v21, 0.0  ;;  %v1184_v26 = vmul.f32 %v1177_v16, %v1168_v20 }
 0x486   :  { %v1171_v27 = vmax.f32 %v1166_v24, 0.0  ;;  %v1185_v28 = vmul.f32 %v1181_v19, %v1169_v23 }
 0x487   :  { %v1186_v29 = vmul.f32 %v1177_v16, %v1170_v25 }
 0x488   :  { %v1187_v30 = vmul.f32 %v1181_v19, %v1171_v27  ;;  %v1188_v31 = vadd.f32 %v1185_v28, %v1184_v26 }
 0x48a   :  { %1189 = vadd.xlane.f32.xlu1 %v1188_v31  ;;  %v1191_v32 = vadd.f32 %v1187_v30, %v1186_v29 }
 0x48e   :  { %1192 = vadd.xlane.f32.xlu1 %v1191_v32 }
 0x49f   :  { %1200 = vrot.lane.b32.xlu1 %v837_v33, %s1578_s24 }
 0x517   :  { %v1190_v55 = vpop.xlane.xlu1 %1189 }
 0x518   :  { %v1194_v34 = vadd.f32 %v1309_v58, %v1190_v55 }
 0x51a   :  { %v1204_v36 = vmul.f32 %v1199_v35, %v1194_v34 }
 0x51b   :  { %v1193_v37 = vpop.xlane.xlu1 %1192 }
 0x51c   :  { %1208 = vrot.lane.b32.xlu1 %v1204_v36, %s1579_s7  ;;  %v1195_v38 = vadd.f32 %v1309_v58, %v1193_v37 }
 0x51f   :  { %v1201_v39 = vpop.permute.xlu1 %1200 }
 0x520   :  { %v1205_v40 = vmul.f32 %v1201_v39, %v1195_v38 }
 0x522   :  { %1210 = vrot.lane.b32.xlu1 %v1205_v40, %s1579_s7 }
 0x58e   :  { %v1209_v41 = vpop.permute.xlu1 %1208 }
 0x58f   :  { %1215 = vst.msk [vmem:[%s2044_s8] sm:$0xff] %vm1214_vm3, %v1209_v41 }
 0x594   :  { %v1211_v42 = vpop.permute.xlu1 %1210 }
 0x595   :  { %1216 = vst.msk [vmem:[%s2044_s8 + $0x8] sm:$0xff] %vm1214_vm3, %v1211_v42 }

</bundles_post_ra>
